<compile_context>
chip_gen: v7x
topology: tpu7x:2x2x1
jax: 0.10.0
libtpu: 0.0.40
codegen_flags: <defaults>
</compile_context>

<pallas_src>
import jax
import jax.numpy as jnp
from jax.experimental import pallas as pl
from jax.experimental.pallas import tpu as pltpu


# Double-buffered weight-block budget. 24 MiB is comfortable on every
# generation (v7x has only 64 MiB physical VMEM) while leaving room for the
# xy / bias / output buffers.
_WEIGHT_BLOCK_BUDGET_BYTES = 24 << 20


def _concat_linear_kernel(xy_ref, wt_ref, b_ref, o_ref):
    """One output-feature tile: o = xy @ Wt_tile + b_tile.

    wt_ref is the pre-transposed weight block (C_in, tn): input features on
    the sublane axis, output features on the lane axis (natural MXU layout).
    Accumulation is f32; bias stays f32.
    """
    acc = jnp.dot(xy_ref[...].astype(wt_ref.dtype), wt_ref[...],
                  preferred_element_type=jnp.float32)
    o_ref[...] = (acc + b_ref[...]).astype(o_ref.dtype)


def _pick_n_tile(c, itemsize):
    """Tile the output-feature (lane) axis only when VMEM actually needs it."""
    # Whole weight fits comfortably double-buffered -> single block, grid=(1,).
    if 2 * c * c * itemsize <= _WEIGHT_BLOCK_BUDGET_BYTES:
        return c
    # Otherwise biggest lane-multiple column block that fits the budget.
    for tn in (2048, 1024, 512, 256, 128):
        if c % tn == 0 and 2 * c * tn * itemsize <= _WEIGHT_BLOCK_BUDGET_BYTES:
            return tn
    # C not a multiple of 128 (or pathologically large): fall back to a single
    # full block (correct; masked partial stores are a perf-only concern).
    return c


def prepare_concat_linear_params(weight, bias, weight_dtype=jnp.bfloat16):
    """One-time param prep (hoisted out of the forward path).

    weight: (C, C) in PyTorch (out_features, in_features) layout.
    bias:   (C,)
    Returns (wt, bias2d): wt is (C_in, C_out) in `weight_dtype` (bf16 by
    default; pass None to keep f32), bias2d is (1, C) f32.
    """
    wt = jnp.asarray(weight).T                      # (in, out) once, not per call
    if weight_dtype is not None and wt.dtype != jnp.dtype(weight_dtype):
        wt = wt.astype(weight_dtype)
    b2d = jnp.asarray(bias).astype(jnp.float32).reshape(1, -1)
    return wt, b2d


def concat_linear(x, y, wt, bias2d):
    """x: (1, Fx), y: (1, Fy); wt: (C, C) pre-transposed (in, out); bias2d: (1, C).

    Returns (_x, _y) with shapes (Fx,), (Fy,) matching the PyTorch module.
    Use prepare_concat_linear_params() once to build wt / bias2d.
    """
    fx = x.shape[-1]
    fy = y.shape[-1]
    c = fx + fy
    assert x.shape == (1, fx) and y.shape == (1, fy)
    assert wt.shape == (c, c) and bias2d.shape == (1, c)

    # Single (1, C) operand: one dot per tile, no split-K, no Fx alignment
    # dependence inside the kernel.
    xy = jnp.concatenate([x, y], axis=-1)

    w_itemsize = jnp.dtype(wt.dtype).itemsize
    tn = _pick_n_tile(c, w_itemsize)
    n_tiles = c // tn if c % tn == 0 else 1

    # Explicit scoped-VMEM limit: weight block double-buffered + small operands.
    vmem_needed = (2 * c * tn * w_itemsize          # weight column block x2
                   + 2 * c * jnp.dtype(x.dtype).itemsize  # xy x2
                   + 4 * tn * 4                     # bias + out, x2, f32-ish
                   + (2 << 20))                     # slack
    vmem_limit = int(max(vmem_needed, 32 << 20))

    out_itemsize = jnp.dtype(x.dtype).itemsize
    cost = pl.CostEstimate(
        flops=2 * c * c,
        transcendentals=0,
        bytes_accessed=(c * c * w_itemsize          # weight (dominant stream)
                        + c * out_itemsize          # xy
                        + c * 4                     # bias (f32)
                        + c * out_itemsize),        # output
    )

    out = pl.pallas_call(
        _concat_linear_kernel,
        out_shape=jax.ShapeDtypeStruct((1, c), x.dtype),
        grid=(n_tiles,),
        in_specs=[
            pl.BlockSpec((1, c), lambda j: (0, 0)),    # xy row (reused per tile)
            pl.BlockSpec((c, tn), lambda j: (0, j)),   # weight column block
            pl.BlockSpec((1, tn), lambda j: (0, j)),   # bias block
        ],
        out_specs=pl.BlockSpec((1, tn), lambda j: (0, j)),
        compiler_params=pltpu.CompilerParams(
            # Output-feature tiles are independent; when n_tiles >= 2 v7x's two
            # TensorCores can each stream half the weight. No-op for grid=(1,).
            dimension_semantics=("parallel",),
            vmem_limit_bytes=vmem_limit,
        ),
        cost_estimate=cost,
    )(xy, wt, bias2d)

    xy_out = jnp.squeeze(out, 0)          # (C,)
    return xy_out[:fx], xy_out[fx:]


def init_linear_params(key, in_features, out_features, dtype=jnp.float32):
    """Deterministic nn.Linear-style init: U(-k, k), k = 1/sqrt(in_features)."""
    kw, kb = jax.random.split(key)
    k = 1.0 / jnp.sqrt(jnp.array(in_features, dtype=jnp.float32))
    weight = jax.random.uniform(
        kw, (out_features, in_features), dtype=dtype, minval=-k, maxval=k
    )
    bias = jax.random.uniform(
        kb, (out_features,), dtype=dtype, minval=-k, maxval=k
    )
    return weight, bias


if __name__ == "__main__":
    # --- Case 1: module-sized small shapes, default bf16 weights, grid=(1,) --
    Fx, Fy = 32, 96                    # C = 128 (lane-friendly)
    C = Fx + Fy
    kx, ky, kp = jax.random.split(jax.random.PRNGKey(0), 3)
    x = jax.random.normal(kx, (1, Fx), dtype=jnp.float32)
    y = jax.random.normal(ky, (1, Fy), dtype=jnp.float32)
    weight, bias = init_linear_params(kp, C, C)

    # One-time prep (transpose + bf16 cast hoisted out of the forward path).
    wt, b2d = prepare_concat_linear_params(weight, bias)          # bf16 default
    _x, _y = concat_linear(x, y, wt, b2d)
    jax.block_until_ready(_x)
    jax.block_until_ready(_y)

    xy_ref = jnp.concatenate([x, y], axis=-1) @ weight.T + bias
    xy_ref = jnp.squeeze(xy_ref, 0)
    assert _x.shape == (Fx,) and _y.shape == (Fy,)
    # bf16 weights: loose tolerance vs. f32 reference (f32 accumulation kept).
    assert jnp.allclose(_x, xy_ref[:Fx], atol=5e-2, rtol=5e-2)
    assert jnp.allclose(_y, xy_ref[Fx:], atol=5e-2, rtol=5e-2)

    # --- Case 2: larger C, explicit f32 weights, still a single VMEM block ---
    Fx2, Fy2 = 128, 384                # C = 512 -> whole weight fits, grid=(1,)
    C2 = Fx2 + Fy2
    kx2, ky2, kp2 = jax.random.split(jax.random.PRNGKey(1), 3)
    x2 = jax.random.normal(kx2, (1, Fx2), dtype=jnp.float32)
    y2 = jax.random.normal(ky2, (1, Fy2), dtype=jnp.float32)
    w2, b2 = init_linear_params(kp2, C2, C2)

    wt2, b2d2 = prepare_concat_linear_params(w2, b2, weight_dtype=None)  # f32
    _x2, _y2 = concat_linear(x2, y2, wt2, b2d2)
    jax.block_until_ready(_x2)
    jax.block_until_ready(_y2)

    xy2_ref = jnp.concatenate([x2, y2], axis=-1) @ w2.T + b2
    xy2_ref = jnp.squeeze(xy2_ref, 0)
    assert _x2.shape == (Fx2,) and _y2.shape == (Fy2,)
    assert jnp.allclose(_x2, xy2_ref[:Fx2], atol=1e-5, rtol=1e-5)
    assert jnp.allclose(_y2, xy2_ref[Fx2:], atol=1e-5, rtol=1e-5)

    print("KERNEL_OK")
</pallas_src>

<mosaic_0001>
module attributes {stable_mosaic.version = 11 : i64} {
  func.func @_concat_linear_kernel(%arg0: i32, %arg1: memref<1x128xf32, #tpu.memory_space<vmem>>, %arg2: memref<128x128xbf16, #tpu.memory_space<vmem>>, %arg3: memref<1x128xf32, #tpu.memory_space<vmem>>, %arg4: memref<1x128xf32, #tpu.memory_space<vmem>>) attributes {dimension_semantics = [#tpu.dimension_semantics<parallel>], iteration_bounds = array<i64: 1>, scalar_prefetch = 0 : i64, scratch_operands = 0 : i64, tpu.core_type = #tpu.core_type<tc>, window_params = [{pipeline_mode = #tpu.pipeline_mode<synchronous>, transform_indices = @transform_0, window_bounds = array<i64: 1, 128>}, {transform_indices = @transform_1, window_bounds = array<i64: 128, 128>}, {transform_indices = @transform_2, window_bounds = array<i64: 1, 128>}, {transform_indices = @transform_3, window_bounds = array<i64: 1, 128>}]} {
    %c0 = arith.constant 0 : index
    %c0_0 = arith.constant 0 : index
    %0 = vector.load %arg1[%c0, %c0_0] : memref<1x128xf32, #tpu.memory_space<vmem>>, vector<1x128xf32>
    %1 = arith.truncf %0 : vector<1x128xf32> to vector<1x128xbf16>
    %c0_1 = arith.constant 0 : index
    %c0_2 = arith.constant 0 : index
    %2 = vector.load %arg2[%c0_1, %c0_2] : memref<128x128xbf16, #tpu.memory_space<vmem>>, vector<128x128xbf16>
    %cst = arith.constant dense<0.000000e+00> : vector<1x128xf32>
    %3 = tpu.matmul %1, %2, %cst {dimension_numbers = #tpu.dot_dimension_numbers<[1], [0], [0], [1], [0, 0, 1, 1], [], []>} : vector<1x128xbf16>, vector<128x128xbf16>, vector<1x128xf32> -> vector<1x128xf32>
    %c0_3 = arith.constant 0 : index
    %c0_4 = arith.constant 0 : index
    %4 = vector.load %arg3[%c0_3, %c0_4] : memref<1x128xf32, #tpu.memory_space<vmem>>, vector<1x128xf32>
    %5 = arith.addf %3, %4 : vector<1x128xf32>
    %c0_5 = arith.constant 0 : index
    %c0_6 = arith.constant 0 : index
    %6 = vector.load %arg4[%c0_5, %c0_6] : memref<1x128xf32, #tpu.memory_space<vmem>>, vector<1x128xf32>
    tpu.vector_store %arg4[%c0_5, %c0_6], %5 {strides = array<i32>} : memref<1x128xf32, #tpu.memory_space<vmem>>, vector<1x128xf32>,
    return
  }
  func.func @transform_0(%arg0: i32) -> (i32, i32) {
    %c0_i32 = arith.constant 0 : i32
    %c0_i32_0 = arith.constant 0 : i32
    %c0_i32_1 = arith.constant 0 : i32
    return %c0_i32, %c0_i32_0 : i32, i32
  }
  func.func @transform_1(%arg0: i32) -> (i32, i32) {
    %c0_i32 = arith.constant 0 : i32
    %c0_i32_0 = arith.constant 0 : i32
    return %c0_i32, %arg0 : i32, i32
  }
  func.func @transform_2(%arg0: i32) -> (i32, i32) {
    %c0_i32 = arith.constant 0 : i32
    %c0_i32_0 = arith.constant 0 : i32
    return %c0_i32, %arg0 : i32, i32
  }
  func.func @transform_3(%arg0: i32) -> (i32, i32) {
    %c0_i32 = arith.constant 0 : i32
    %c0_i32_0 = arith.constant 0 : i32
    return %c0_i32, %arg0 : i32, i32
  }
}

</mosaic_0001>

<bundles_post_ra>
// kernel: tpu_custom_call.1
= control target key start
LH: loop header
LB: loop body
LE: loop exit
PB: predicated region body
PF: predicated region fallthrough
CT: control target
= control target key end

     0   :  { %8 = vsyncpa [#allocation3], 0  ;;  %s363_s0 = inlined_call_operand.hbm [shape: f32[1,128], index: 0, kind: input, shape index: {}]   ;;  %s364_s1 = inlined_call_operand.hbm [shape: bf16[128,128], index: 1, kind: input, shape index: {}]   ;;  %s365_s2 = inlined_call_operand.vmem [shape: f32[1,128], index: 2, kind: input, shape index: {}]   ;;  %s366_s3 = inlined_call_operand.hbm [shape: f32[1,128], index: 3, kind: output, shape index: {}]  }
   0x1   :  { %9 = vsyncpa [#allocation6], 0 }
   0x2   :  { %10 = vsyncpa [#allocation4], 0  ;;  %s290_s12 = smov [#allocation2]   ;;  %s291_s14 = smov [#allocation5]  }
   0x3   :  { %s17_s13 = sshll.u32 %s290_s12, 4  ;;  %s26_s15 = sshll.u32 %s291_s14, 4  ;;  %s18_s13 = int_to_ptr.vmem [resolvable:$true] %s17_s13  ;;  %s317_s15 = int_to_ptr.vmem [resolvable:$true] %s26_s15 }
   0x4   :  { %s218_s18 = scalar_lea.hbm %s363_s0, 16 }
   0x5   :  { %p219_p0 = scmp.ne.s32.totalorder %s363_s0, %s218_s18  ;;  %p222_p1 = scmp.lt.u32.totalorder %s218_s18, %s363_s0 }
   0x7   :  { %p224_p2 = pnand %p222_p1, %p219_p0 }
   0x9   :  { %227 = shalt.err (!%p224_p2)
}
   0xa   :  { %s228_s23 = scalar_lea.vmem %s18_s13, 16  ;;  %s232_s24 = scalar_lea.vmem %s18_s13, 32 }
   0xb   :  { %p229_p3 = scmp.ne.s32.totalorder %s18_s13, %s228_s23  ;;  %p233_p4 = scmp.lt.s32.totalorder %s18_s13, %s18_s13 }
   0xc   :  { %p234_p5 = scmp.lt.s32.totalorder %s232_s24, %s228_s23 }
   0xe   :  { %p235_p6 = por %p234_p5, %p233_p4 }
  0x10   :  { %p236_p7 = pnand %p235_p6, %p229_p3 }
  0x12   :  { %239 = shalt.err (!%p236_p7)
}
  0x13   :  { %20 = dma.hbm_to_vmem [thread:$0]  %s363_s0, 16, %s18_s13, [#allocation3]  }
  0x14   :  { %s240_s29 = scalar_lea.hbm %s364_s1, 1024 }
  0x15   :  { %p241_p8 = scmp.ne.s32.totalorder %s364_s1, %s240_s29  ;;  %p244_p9 = scmp.lt.u32.totalorder %s240_s29, %s364_s1 }
  0x17   :  { %p246_p10 = pnand %p244_p9, %p241_p8 }
  0x19   :  { %249 = shalt.err (!%p246_p10)
}
  0x1a   :  { %s250_s7 = scalar_lea.vmem %s317_s15, 1024  ;;  %p255_p12 = scmp.lt.s32.totalorder %s317_s15, %s317_s15 }
  0x1b   :  { %p251_p11 = scmp.ne.s32.totalorder %s317_s15, %s250_s7  ;;  %p256_p13 = scmp.lt.s32.totalorder %s250_s7, %s250_s7 }
  0x1d   :  { %p257_p0 = por %p256_p13, %p255_p12 }
  0x1f   :  { %p258_p1 = pnand %p257_p0, %p251_p11 }
  0x21   :  { %261 = shalt.err (!%p258_p1)
}
  0x22   :  { %s292_s0 = smov 64   ;;  %s293_s8 = smov 4  }
  0x23   :  { %32 = dma.hbm_to_vmem [thread:$0]  %s364_s1, 1024, %s317_s15, [#allocation6], %s292_s0, %s292_s0, %s293_s8  }
  0x24   :  { %284 = dma.done.wait [#allocation3], 16  }
  0x25   :  { %285 = vsyncadd [#allocation3], 4294967280 }
  0x26   :  { %286 = dma.done.wait [#allocation6], 1024  }
  0x27   :  { %287 = vsyncadd [#allocation6], 4294966272  ;;  %v294_v0 = vmov 0.0   ;;  %vm295_vm0 = vmmov 0   ;;  %v210_v1 = vld [vmem:[#allocation5] sm:$0xff]   ;;  %v211_v2 = vld [vmem:[#allocation5 + $0x8] sm:$0xff]  }
  0x28   :  { %183 = vmatprep.subr.bf16.mxu0 %v294_v0  ;;  %199 = vmatprep.mubr.msk.bf16.mxu0 %vm295_vm0, %v294_v0  ;;  %v212_v3 = vld [vmem:[#allocation5 + $0x10] sm:$0xff]   ;;  %v213_v4 = vld [vmem:[#allocation5 + $0x18] sm:$0xff]   ;;  %v214_v5 = vld [vmem:[#allocation5 + $0x20] sm:$0xff]   ;;  %s296_s12 = smov [#allocation7]  }
  0x29   :  { %184 = vmatpush3.bf16.msra.mxu0 %v210_v1  ;;  %v215_v6 = vld [vmem:[#allocation5 + $0x28] sm:$0xff]   ;;  %v216_v7 = vld [vmem:[#allocation5 + $0x30] sm:$0xff]   ;;  %v217_v8 = vld [vmem:[#allocation5 + $0x38] sm:$0xff]   ;;  %s156_s13 = sshll.u32 %s296_s12, 4  ;;  %s157_s13 = int_to_ptr.vmem [resolvable:$true] %s156_s13 }
  0x2a   :  { %185 = vmatprep.subr.bf16.mxu0 %v294_v0  ;;  %v42_v9 = vld [vmem:[#allocation2] sm:$0x1]  ;;  %s262_s14 = scalar_lea.vmem %s157_s13, 16  ;;  %s266_s15 = scalar_lea.vmem %s157_s13, 32 }
  0x2b   :  { %v43_v10 = vpack.c.bf16 %v42_v9, %v42_v9  ;;  %v60_v11 = vld [vmem:[%s365_s2] sm:$0x1]  ;;  %p263_p2 = scmp.ne.s32.totalorder %s157_s13, %s262_s14  ;;  %p267_p3 = scmp.lt.s32.totalorder %s157_s13, %s157_s13 }
  0x2c   :  { %p268_p4 = scmp.lt.s32.totalorder %s266_s15, %s262_s14 }
  0x2d   :  { %186 = vmatpush3.bf16.msra.mxu0 %v211_v2 }
  0x2e   :  { %187 = vmatprep.subr.bf16.mxu0 %v294_v0  ;;  %p269_p5 = por %p268_p4, %p267_p3 }
  0x30   :  { %p270_p6 = pnand %p269_p5, %p263_p2 }
  0x31   :  { %188 = vmatpush3.bf16.msra.mxu0 %v212_v3 }
  0x32   :  { %189 = vmatprep.subr.bf16.mxu0 %v294_v0 }
  0x35   :  { %190 = vmatpush3.bf16.msra.mxu0 %v213_v4 }
  0x36   :  { %191 = vmatprep.subr.bf16.mxu0 %v294_v0 }
  0x39   :  { %192 = vmatpush3.bf16.msra.mxu0 %v214_v5 }
  0x3a   :  { %193 = vmatprep.subr.bf16.mxu0 %v294_v0 }
  0x3d   :  { %194 = vmatpush3.bf16.msra.mxu0 %v215_v6 }
  0x3e   :  { %195 = vmatprep.subr.bf16.mxu0 %v294_v0 }
  0x41   :  { %196 = vmatpush3.bf16.msra.mxu0 %v216_v7 }
  0x42   :  { %197 = vmatprep.subr.bf16.mxu0 %v294_v0 }
  0x45   :  { %198 = vmatpush3.bf16.msra.mxu0 %v217_v8 }
  0x48   :  { %200 = vmatmul.mubr.bf16.vlgmr.msra.gmra.mrb[0].mxu0 %v43_v10 }
 0x11b   :  { %v143_v12 = vpop.f32.mrb[0].mxu0 }
 0x11c   :  { %v144_v13 = vadd.f32 %v143_v12, %v60_v11  ;;  %v201_v14 = vpop.f32.mrb[1].mxu0 }
 0x11d   :  { %v146_v15 = vpop.f32.mrb[2].mxu0 }
 0x11e   :  { %149 = vst [vmem:[#allocation7] sm:$0x1] %v144_v13  ;;  %v202_v16 = vpop.f32.mrb[3].mxu0 }
 0x11f   :  { %273 = shalt.err (!%p270_p6)
}
 0x120   :  { %s274_s2 = scalar_lea.hbm %s366_s3, 16 }
 0x121   :  { %p275_p7 = scmp.ne.s32.totalorder %s366_s3, %s274_s2  ;;  %p278_p8 = scmp.lt.u32.totalorder %s274_s2, %s366_s3 }
 0x123   :  { %p280_p9 = pnand %p278_p8, %p275_p7 }
 0x125   :  { %283 = shalt.err (!%p280_p9)
}
 0x126   :  { %159 = dma.vmem_to_hbm [thread:$0]  %s157_s13, 16, %s366_s3, [#allocation4]  }
 0x127   :  { %288 = dma.done.wait [#allocation4], 16  }
 0x128   :  { %289 = vsyncadd [#allocation4], 4294967280 }
 0x129   :  { %163 = vsyncpa [#allocation3], 1 }
 0x12a   :  { %164 = vsyncpa [#allocation6], 1 }
 0x12b   :  { %165 = vsyncpa [#allocation4], 1 }

</bundles_post_ra>
